<compile_context>
chip_gen: v6e
topology: v6e:2x2x1
jax: 0.10.0
libtpu: 0.0.40
codegen_flags: <defaults>
</compile_context>

<pallas_src>
import functools

import jax
import jax.numpy as jnp
from jax import lax
from jax.experimental import pallas as pl
from jax.experimental.pallas import tpu as pltpu


def _dwpw_kernel(x_ref, dww_ref, pww_ref, pwb_ref, out_ref, depth_ref,
                 *, k, pad, l_in, l_out, mxu_dtype):
    """One batch element per grid step (k > 1 path).

    x_ref    : (1, C_in, L)       unpadded input
    dww_ref  : (C_in, k)          depthwise weights, f32
    pww_ref  : (C_out, C_in)      pointwise 1x1 weights, mxu_dtype
    pwb_ref  : (C_out, 1)         fused bias (W_pw @ b_dw + b_pw), f32
    out_ref  : (1, C_out, L_out)
    depth_ref: (C_in, L_out)      f32 scratch accumulator
    """
    dww = dww_ref[...]                         # (C_in, k) f32, loaded once

    # Static per-tap output ranges. out[i] += w[t] * x[i + (t - pad)]; taps whose
    # source column falls outside [0, L) are skipped -> identical to zero padding.
    taps = []
    for t in range(k):
        s = t - pad
        lo = max(0, -s)                        # first valid output column for this tap
        hi = min(l_out, l_in - s)              # one past the last valid output column
        if hi > lo:
            taps.append((t, s, lo, hi))

    if not taps:                               # degenerate shapes only; keep correct
        depth_ref[...] = jnp.zeros_like(depth_ref)
    else:
        c_in = depth_ref.shape[0]
        # Initialize with the widest-coverage tap (direct store: no full zero pass),
        # then zero only the edge columns that tap does not reach.
        bt, bs, blo, bhi = max(taps, key=lambda r: r[3] - r[2])
        xs = x_ref[0, :, blo + bs:bhi + bs].astype(jnp.float32)
        depth_ref[:, blo:bhi] = xs * dww[:, bt:bt + 1]
        if blo > 0:
            depth_ref[:, :blo] = jnp.zeros((c_in, blo), jnp.float32)
        if bhi < l_out:
            depth_ref[:, bhi:] = jnp.zeros((c_in, l_out - bhi), jnp.float32)
        # Remaining taps: shifted, per-channel-scaled accumulates on the VPU.
        for t, s, lo, hi in taps:
            if t == bt:
                continue
            xs = x_ref[0, :, lo + s:hi + s].astype(jnp.float32)
            depth_ref[:, lo:hi] += xs * dww[:, t:t + 1]

    # Pointwise (1x1) conv: channel-mixing matmul on the MXU, f32 accumulation.
    out = jnp.dot(pww_ref[...], depth_ref[...].astype(mxu_dtype),
                  preferred_element_type=jnp.float32)
    out_ref[0] = (out + pwb_ref[...]).astype(out_ref.dtype)


def _pw_kernel(x_ref, pww_ref, pwb_ref, out_ref, *, mxu_dtype):
    """k == 1 path: depthwise stage is nn.Identity -> just the 1x1 matmul."""
    x = x_ref[0].astype(mxu_dtype)                        # (C_in, L)
    out = jnp.dot(pww_ref[...], x, preferred_element_type=jnp.float32)
    out_ref[0] = (out + pwb_ref[...]).astype(out_ref.dtype)


def depth_pointwise_conv1d(x, dw_weight, dw_bias, pw_weight, pw_bias, k,
                           *, mxu_dtype=jnp.bfloat16):
    """Equivalent of Depth_Pointwise_Conv1d.forward.

    x         : (B, C_in, L)
    dw_weight : (C_in, 1, k)  or None when k == 1 (nn.Identity)
    dw_bias   : (C_in,)       or None when k == 1
    pw_weight : (C_out, C_in, 1)
    pw_bias   : (C_out,)
    mxu_dtype : dtype fed to the MXU (bf16 default; pass jnp.float32 for exact f32).
    """
    B, C_in, L = x.shape
    C_out = pw_weight.shape[0]

    pww_f32 = pw_weight.reshape(C_out, C_in).astype(jnp.float32)
    pwb = pw_bias.reshape(C_out, 1).astype(jnp.float32)

    cparams = pltpu.CompilerParams(
        dimension_semantics=("parallel",),
        vmem_limit_bytes=64 * 1024 * 1024,
    )

    if k == 1:
        pww = pww_f32.astype(mxu_dtype)
        kernel = functools.partial(_pw_kernel, mxu_dtype=mxu_dtype)
        return pl.pallas_call(
            kernel,
            out_shape=jax.ShapeDtypeStruct((B, C_out, L), x.dtype),
            grid_spec=pltpu.PrefetchScalarGridSpec(
                num_scalar_prefetch=0,
                grid=(B,),
                in_specs=[
                    pl.BlockSpec((1, C_in, L), lambda b: (b, 0, 0)),
                    pl.BlockSpec((C_out, C_in), lambda b: (0, 0)),
                    pl.BlockSpec((C_out, 1), lambda b: (0, 0)),
                ],
                out_specs=pl.BlockSpec((1, C_out, L), lambda b: (b, 0, 0)),
            ),
            compiler_params=cparams,
        )(x, pww, pwb)

    pad = k // 2
    l_out = L + 2 * pad - k + 1          # matches PyTorch Conv1d (L for odd k, L+1 for even k)

    dww = dw_weight.reshape(C_in, k).astype(jnp.float32)
    dwb = dw_bias.reshape(C_in, 1).astype(jnp.float32)
    # Fold the depthwise bias into the pointwise bias (tiny host-side matmul, f32):
    #   W_pw @ (depth + b_dw) + b_pw == W_pw @ depth + (W_pw @ b_dw + b_pw)
    fused_bias = pww_f32 @ dwb + pwb      # (C_out, 1)
    pww = pww_f32.astype(mxu_dtype)

    kernel = functools.partial(_dwpw_kernel, k=k, pad=pad, l_in=L, l_out=l_out,
                               mxu_dtype=mxu_dtype)

    # TODO(synk): for very long L, add an L-tile grid axis (tile multiple of 128) with a
    # (k-1)-lane halo over-fetch to bound VMEM on v7x's 64 MiB and expose a second
    # parallel axis; at the shapes used here the whole (C, L) slab fits comfortably.
    return pl.pallas_call(
        kernel,
        out_shape=jax.ShapeDtypeStruct((B, C_out, l_out), x.dtype),
        grid_spec=pltpu.PrefetchScalarGridSpec(
            num_scalar_prefetch=0,
            grid=(B,),
            in_specs=[
                pl.BlockSpec((1, C_in, L), lambda b: (b, 0, 0)),
                pl.BlockSpec((C_in, k), lambda b: (0, 0)),
                pl.BlockSpec((C_out, C_in), lambda b: (0, 0)),
                pl.BlockSpec((C_out, 1), lambda b: (0, 0)),
            ],
            out_specs=pl.BlockSpec((1, C_out, l_out), lambda b: (b, 0, 0)),
            scratch_shapes=[pltpu.VMEM((C_in, l_out), jnp.float32)],
        ),
        compiler_params=cparams,
    )(x, dww, pww, fused_bias)


def _reference(x, dw_weight, dw_bias, pw_weight, pw_bias, k):
    """Pure-JAX reference mirroring PyTorch Conv1d semantics."""
    C_in = x.shape[1]
    h = x
    if k != 1:
        h = lax.conv_general_dilated(
            x, dw_weight, window_strides=(1,), padding=[(k // 2, k // 2)],
            dimension_numbers=("NCH", "OIH", "NCH"),
            feature_group_count=C_in)
        h = h + dw_bias[None, :, None]
    out = lax.conv_general_dilated(
        h, pw_weight, window_strides=(1,), padding=[(0, 0)],
        dimension_numbers=("NCH", "OIH", "NCH"))
    return out + pw_bias[None, :, None]


if __name__ == "__main__":
    B, C_in, C_out, L, K = 2, 4, 8, 16, 3

    key = jax.random.PRNGKey(0)
    k1, k2, k3, k4, k5, k6, k7 = jax.random.split(key, 7)

    x = jax.random.normal(k1, (B, C_in, L), dtype=jnp.float32)
    dw_weight = jax.random.uniform(k2, (C_in, 1, K), jnp.float32, -0.5, 0.5)
    dw_bias = jax.random.uniform(k3, (C_in,), jnp.float32, -0.5, 0.5)
    pw_weight = jax.random.uniform(k4, (C_out, C_in, 1), jnp.float32, -0.5, 0.5)
    pw_bias = jax.random.uniform(k5, (C_out,), jnp.float32, -0.5, 0.5)

    ref = _reference(x, dw_weight, dw_bias, pw_weight, pw_bias, K)

    # Default path: bf16 MXU operands, f32 accumulation (looser tolerance).
    out_bf16 = depth_pointwise_conv1d(x, dw_weight, dw_bias, pw_weight, pw_bias, K)
    out_bf16 = jax.block_until_ready(out_bf16)
    assert out_bf16.shape == ref.shape, (out_bf16.shape, ref.shape)
    assert jnp.allclose(out_bf16, ref, atol=5e-2, rtol=5e-2), "mismatch (bf16 MXU)"

    # Exact f32 path: tight tolerance.
    out_f32 = depth_pointwise_conv1d(x, dw_weight, dw_bias, pw_weight, pw_bias, K,
                                     mxu_dtype=jnp.float32)
    out_f32 = jax.block_until_ready(out_f32)
    assert jnp.allclose(out_f32, ref, atol=1e-5, rtol=1e-5), "mismatch (f32 MXU)"

    # k == 1 (Identity depthwise) specialized path.
    ref1 = _reference(x, None, None, pw_weight, pw_bias, 1)
    out1 = depth_pointwise_conv1d(x, None, None, pw_weight, pw_bias, 1,
                                  mxu_dtype=jnp.float32)
    out1 = jax.block_until_ready(out1)
    assert jnp.allclose(out1, ref1, atol=1e-5, rtol=1e-5), "mismatch (k=1)"

    # Even kernel size (L_out = L + 1) exercises the edge/halo + edge zero-fill path.
    K4 = 4
    dw_w4 = jax.random.uniform(k6, (C_in, 1, K4), jnp.float32, -0.5, 0.5)
    dw_b4 = jax.random.uniform(k7, (C_in,), jnp.float32, -0.5, 0.5)
    ref4 = _reference(x, dw_w4, dw_b4, pw_weight, pw_bias, K4)
    out4 = depth_pointwise_conv1d(x, dw_w4, dw_b4, pw_weight, pw_bias, K4,
                                  mxu_dtype=jnp.float32)
    out4 = jax.block_until_ready(out4)
    assert out4.shape == ref4.shape, (out4.shape, ref4.shape)
    assert jnp.allclose(out4, ref4, atol=1e-5, rtol=1e-5), "mismatch (k=4)"

    print("KERNEL_OK")
</pallas_src>

<mosaic_0001>
module attributes {stable_mosaic.version = 11 : i64} {
  func.func @_dwpw_kernel(%arg0: i32, %arg1: memref<1x4x16xf32, #tpu.memory_space<vmem>>, %arg2: memref<4x3xf32, #tpu.memory_space<vmem>>, %arg3: memref<8x4xbf16, #tpu.memory_space<vmem>>, %arg4: memref<8x1xf32, #tpu.memory_space<vmem>>, %arg5: memref<1x8x16xf32, #tpu.memory_space<vmem>>, %arg6: memref<4x16xf32, #tpu.memory_space<vmem>>) attributes {dimension_semantics = [#tpu.dimension_semantics<parallel>], iteration_bounds = array<i64: 2>, scalar_prefetch = 0 : i64, scratch_operands = 1 : i64, tpu.core_type = #tpu.core_type<tc>, window_params = [{transform_indices = @transform_0, window_bounds = array<i64: 1, 4, 16>}, {pipeline_mode = #tpu.pipeline_mode<synchronous>, transform_indices = @transform_1, window_bounds = array<i64: 4, 3>}, {pipeline_mode = #tpu.pipeline_mode<synchronous>, transform_indices = @transform_2, window_bounds = array<i64: 8, 4>}, {pipeline_mode = #tpu.pipeline_mode<synchronous>, transform_indices = @transform_3, window_bounds = array<i64: 8, 1>}, {transform_indices = @transform_4, window_bounds = array<i64: 1, 8, 16>}]} {
    %c0 = arith.constant 0 : index
    %c0_0 = arith.constant 0 : index
    %0 = vector.load %arg2[%c0, %c0_0] : memref<4x3xf32, #tpu.memory_space<vmem>>, vector<4x3xf32>
    %c0_1 = arith.constant 0 : index
    %c0_2 = arith.constant 0 : index
    %c0_3 = arith.constant 0 : index
    %1 = vector.load %arg1[%c0_1, %c0_2, %c0_3] : memref<1x4x16xf32, #tpu.memory_space<vmem>>, vector<1x4x16xf32>
    %2 = vector.shape_cast %1 : vector<1x4x16xf32> to vector<4x16xf32>
    %3 = vector.extract_strided_slice %0 {offsets = [0, 1], sizes = [4, 1], strides = [1, 1]} : vector<4x3xf32> to vector<4x1xf32>
    %4 = vector.broadcast %3 : vector<4x1xf32> to vector<4x16xf32>
    %5 = arith.mulf %2, %4 : vector<4x16xf32>
    %c0_4 = arith.constant 0 : index
    %c0_5 = arith.constant 0 : index
    %6 = vector.load %arg6[%c0_4, %c0_5] : memref<4x16xf32, #tpu.memory_space<vmem>>, vector<4x16xf32>
    tpu.vector_store %arg6[%c0_4, %c0_5], %5 {strides = array<i32>} : memref<4x16xf32, #tpu.memory_space<vmem>>, vector<4x16xf32>,
    %c0_6 = arith.constant 0 : index
    %c0_7 = arith.constant 0 : index
    %c0_8 = arith.constant 0 : index
    %7 = vector.load %arg1[%c0_6, %c0_7, %c0_8] : memref<1x4x16xf32, #tpu.memory_space<vmem>>, vector<1x4x15xf32>
    %8 = vector.shape_cast %7 : vector<1x4x15xf32> to vector<4x15xf32>
    %c0_9 = arith.constant 0 : index
    %c1 = arith.constant 1 : index
    %9 = vector.load %arg6[%c0_9, %c1] : memref<4x16xf32, #tpu.memory_space<vmem>>, vector<4x15xf32>
    %10 = vector.extract_strided_slice %0 {offsets = [0, 0], sizes = [4, 1], strides = [1, 1]} : vector<4x3xf32> to vector<4x1xf32>
    %11 = vector.broadcast %10 : vector<4x1xf32> to vector<4x15xf32>
    %12 = arith.mulf %8, %11 : vector<4x15xf32>
    %13 = arith.addf %9, %12 : vector<4x15xf32>
    %c0_10 = arith.constant 0 : index
    %c1_11 = arith.constant 1 : index
    %14 = vector.load %arg6[%c0_10, %c1_11] : memref<4x16xf32, #tpu.memory_space<vmem>>, vector<4x15xf32>
    tpu.vector_store %arg6[%c0_10, %c1_11], %13 {strides = array<i32>} : memref<4x16xf32, #tpu.memory_space<vmem>>, vector<4x15xf32>,
    %c0_12 = arith.constant 0 : index
    %c0_13 = arith.constant 0 : index
    %c1_14 = arith.constant 1 : index
    %15 = vector.load %arg1[%c0_12, %c0_13, %c1_14] : memref<1x4x16xf32, #tpu.memory_space<vmem>>, vector<1x4x15xf32>
    %16 = vector.shape_cast %15 : vector<1x4x15xf32> to vector<4x15xf32>
    %c0_15 = arith.constant 0 : index
    %c0_16 = arith.constant 0 : index
    %17 = vector.load %arg6[%c0_15, %c0_16] : memref<4x16xf32, #tpu.memory_space<vmem>>, vector<4x15xf32>
    %18 = vector.extract_strided_slice %0 {offsets = [0, 2], sizes = [4, 1], strides = [1, 1]} : vector<4x3xf32> to vector<4x1xf32>
    %19 = vector.broadcast %18 : vector<4x1xf32> to vector<4x15xf32>
    %20 = arith.mulf %16, %19 : vector<4x15xf32>
    %21 = arith.addf %17, %20 : vector<4x15xf32>
    %c0_17 = arith.constant 0 : index
    %c0_18 = arith.constant 0 : index
    %22 = vector.load %arg6[%c0_17, %c0_18] : memref<4x16xf32, #tpu.memory_space<vmem>>, vector<4x15xf32>
    tpu.vector_store %arg6[%c0_17, %c0_18], %21 {strides = array<i32>} : memref<4x16xf32, #tpu.memory_space<vmem>>, vector<4x15xf32>,
    %c0_19 = arith.constant 0 : index
    %c0_20 = arith.constant 0 : index
    %23 = vector.load %arg3[%c0_19, %c0_20] : memref<8x4xbf16, #tpu.memory_space<vmem>>, vector<8x4xbf16>
    %c0_21 = arith.constant 0 : index
    %c0_22 = arith.constant 0 : index
    %24 = vector.load %arg6[%c0_21, %c0_22] : memref<4x16xf32, #tpu.memory_space<vmem>>, vector<4x16xf32>
    %25 = arith.truncf %24 : vector<4x16xf32> to vector<4x16xbf16>
    %cst = arith.constant dense<0.000000e+00> : vector<8x16xf32>
    %26 = tpu.matmul %23, %25, %cst {dimension_numbers = #tpu.dot_dimension_numbers<[1], [0], [0], [1], [0, 0, 1, 1], [], []>} : vector<8x4xbf16>, vector<4x16xbf16>, vector<8x16xf32> -> vector<8x16xf32>
    %c0_23 = arith.constant 0 : index
    %c0_24 = arith.constant 0 : index
    %27 = vector.load %arg4[%c0_23, %c0_24] : memref<8x1xf32, #tpu.memory_space<vmem>>, vector<8x1xf32>
    %28 = vector.broadcast %27 : vector<8x1xf32> to vector<8x16xf32>
    %29 = arith.addf %26, %28 : vector<8x16xf32>
    %c0_25 = arith.constant 0 : index
    %c0_26 = arith.constant 0 : index
    %c0_27 = arith.constant 0 : index
    %30 = vector.load %arg5[%c0_25, %c0_26, %c0_27] : memref<1x8x16xf32, #tpu.memory_space<vmem>>, vector<1x8x16xf32>
    %31 = vector.shape_cast %30 : vector<1x8x16xf32> to vector<8x16xf32>
    %32 = vector.shape_cast %29 : vector<8x16xf32> to vector<1x8x16xf32>
    tpu.vector_store %arg5[%c0_25, %c0_26, %c0_27], %32 {strides = array<i32>} : memref<1x8x16xf32, #tpu.memory_space<vmem>>, vector<1x8x16xf32>,
    return
  }
  func.func @transform_0(%arg0: i32) -> (i32, i32, i32) {
    %c0_i32 = arith.constant 0 : i32
    %c0_i32_0 = arith.constant 0 : i32
    %c0_i32_1 = arith.constant 0 : i32
    return %arg0, %c0_i32, %c0_i32_0 : i32, i32, i32
  }
  func.func @transform_1(%arg0: i32) -> (i32, i32) {
    %c0_i32 = arith.constant 0 : i32
    %c0_i32_0 = arith.constant 0 : i32
    %c0_i32_1 = arith.constant 0 : i32
    return %c0_i32, %c0_i32_0 : i32, i32
  }
  func.func @transform_2(%arg0: i32) -> (i32, i32) {
    %c0_i32 = arith.constant 0 : i32
    %c0_i32_0 = arith.constant 0 : i32
    %c0_i32_1 = arith.constant 0 : i32
    return %c0_i32, %c0_i32_0 : i32, i32
  }
  func.func @transform_3(%arg0: i32) -> (i32, i32) {
    %c0_i32 = arith.constant 0 : i32
    %c0_i32_0 = arith.constant 0 : i32
    %c0_i32_1 = arith.constant 0 : i32
    return %c0_i32, %c0_i32_0 : i32, i32
  }
  func.func @transform_4(%arg0: i32) -> (i32, i32, i32) {
    %c0_i32 = arith.constant 0 : i32
    %c0_i32_0 = arith.constant 0 : i32
    %c0_i32_1 = arith.constant 0 : i32
    return %arg0, %c0_i32, %c0_i32_0 : i32, i32, i32
  }
}

</mosaic_0001>

<bundles_post_ra>
// kernel: tpu_custom_call.1
= control target key start
LH: loop header
LB: loop body
LE: loop exit
PB: predicated region body
PF: predicated region fallthrough
CT: control target
= control target key end

     0   :  { %9 = vsyncpa [#allocation4], 0  ;;  %s636_s0 = inlined_call_operand.vmem [shape: f32[2,4,16], index: 0, kind: input, shape index: {}]   ;;  %s637_s1 = inlined_call_operand.vmem [shape: f32[4,3], index: 1, kind: input, shape index: {}]   ;;  %s638_s2 = inlined_call_operand.vmem [shape: bf16[8,4], index: 2, kind: input, shape index: {}]   ;;  %s639_s3 = inlined_call_operand.vmem [shape: f32[8,1], index: 3, kind: input, shape index: {}]   ;;  %s640_s4 = inlined_call_operand.hbm [shape: f32[2,8,16], index: 4, kind: output, shape index: {}]  }
   0x1   :  { %11 = vsyncpa [#allocation4 + $0x1], 0  ;;  %s528_s15 = smov 0   ;;  %s530_s16 = smov 0  }
   0x2   :  { %s532_s17 = smov 0   ;;  %s534_s18 = smov 0  }
   0x3 LB: > { %s549_s19 = sadd.s32 4294967295, %s493_s18   ;;  %s364_s20 = sadd.s32 4294967294, %s493_s18   ;;  %s493_s18 = sphi %s534_s18, %s646_s18   ;;  %s489_s17 = sphi %s532_s17, %s645_s17   ;;  %s485_s16 = sphi %s530_s16, %s644_s16   ;;  %s481_s15 = sphi %s528_s15, %s643_s15  }
   0x4   : > { %s553_s21 = sadd.s32 1, %s493_s18   ;;  %s113_s22 = sadd.s32 1, %s489_s17 }
   0x5   : > { %s110_s23 = ssub.s32 %s493_s18, %s553_s21  ;;  %p123_p0 = scmp.ne.s32.totalorder %s489_s17, %s485_s16 }
   0x6   : > { %p111_p1 = scmp.eq.s32.totalorder %s110_s23, 0  ;;  %p124_p2 = scmp.eq.s32.totalorder %s549_s19, 1 }
   0x7   : > { %p129_p3 = scmp.ne.s32.totalorder %s485_s16, %s481_s15  ;;  %p130_p4 = scmp.eq.s32.totalorder %s364_s20, 1 }
   0x8   : > { %s564_s24 = scalar_select %p111_p1, %s489_s17, %s113_s22  }
   0x9   : > { %p566_p5 = por %p124_p2, %p123_p0  ;;  %p570_p6 = por %p130_p4, %p129_p3 }
   0xa   : > { %p367_p7 = scmp.ge.s32.totalorder %s493_s18, 1  ;;  %p164_p8 = scmp.lt.s32.totalorder %s493_s18, 3 }
   0xc   : > { %p165_p9 = pnand %p367_p7, %p164_p8 }
   0xd   : > { %p189_p10 = scmp.lt.s32.totalorder (!%p165_p9), %s549_s19, 1  ;;  %s498_s8 = smov (!%p165_p9), 1  }
   0xe   : > { %168 = sbr.rel (%p165_p9) target bundleno = 497 (0x1f1), region = 36  ;;  %s500_s9 = smov (!%p165_p9), 127  }
   0xf   : > { %s186_s14 = sand.u32 (!%p165_p9), 1, %s485_s16   ;;  %s372_s22 = sshll.u32 (!%p165_p9), %s549_s19, 7 }
  0x10   : > { %s368_s20 = sshll.u32 (!%p165_p9), %s186_s14, 3  ;;  %s292_s5 = scalar_lea.sflag (!%p165_p9), [#allocation4], %s186_s14 }
  0x11   : > { %s188_s23 = scalar_lea.vmem (!%p165_p9), [#allocation3], %s368_s20  ;;  %s502_s6 = smov (!%p165_p9), [#allocation3]  }
  0x12   : > { %s305_s27 = sshll.u32 (!%p165_p9), %s188_s23, 4  ;;  %s597_s27 = int_to_ptr.vmem [resolvable:$true] %s305_s27 }
  0x13   : > { %v194_v0 = vld [vmem:[%s637_s1] sm:$0xf]  ;;  %v495_v1 = vmov 0   ;;  %v496_v2 = vmov 1   ;;  %v497_v3 = vmov 2   ;;  %s190_s29 = scalar_select %p189_p10, %s549_s19, 1 }
  0x14   : > { %429 = vset.pattern.permute.xlu0 %v495_v1  ;;  %431 = vset.pattern.permute.xlu1 %v496_v2  ;;  %vm202_vm0 = vcmask 125952   ;;  %v499_v11 = vmov 0.0   ;;  %vm501_vm1 = vmmov 0   ;;  %v235_v14 = vld [vmem:[%s639_s3] sm:$0xff]  ;;  %vm216_vm2 = vcmask 125960   ;;  %s433_s19 = scalar_lea.vmem %s597_s27, 128 }
  0x15   : > { %207 = vperm.xlu0 %429, %v194_v0   ;;  %198 = vperm.xlu1 %431, %v194_v0   ;;  %s369_s30 = sshll.u32 %s190_s29, 2  ;;  %vm230_vm3 = vcmask 117760   ;;  %vm245_vm4 = vcmask 1041408   ;;  %v232_v24 = vld [vmem:[%s638_s2] sm:$0xf]  ;;  %vm241_vm5 = vcmask 31744   ;;  %p434_p11 = scmp.ne.s32.totalorder %s597_s27, %s433_s19 }
  0x16   : > { %s192_s7 = scalar_lea.vmem %s636_s0, %s369_s30  ;;  %377 = vmatprep.subr.bf16.mxu0 %v499_v11  ;;  %379 = vmatprep.mubr.msk.bf16.mxu0 %vm501_vm1, %v499_v11  ;;  %vm289_vm6 = vcmask 130048   ;;  %s595_s30 = scalar_lea.hbm %s640_s4, %s372_s22 }
  0x17   : > { %v204_v4 = vld [vmem:[%s192_s7] sm:$0xf]  ;;  %p435_p12 = pnand %p434_p11, %p566_p5 }
  0x18   : > { %v195_v5 = vld [vmem:[%s192_s7] sm:$0xf] }
  0x19   : > { %430 = vset.pattern.permute.xlu0 %v497_v3  ;;  %v218_v10 = vld [vmem:[%s192_s7] sm:$0xf]  ;;  %p436_p13 = pneg %p435_p12  ;;  %s437_s7 = sshll.u32 %s502_s6, 4  ;;  %s438_s7 = int_to_ptr.vmem [resolvable:$false] %s437_s7 }
  0x1a   : > { %221 = vperm.xlu0 %430, %v194_v0   ;;  %p440_p0 = scmp.lt.s32.totalorder %s597_s27, %s438_s7 }
  0x1e   : > { %432 = vset.pattern.permute.xlu0 %v495_v1 }
  0x1f   : > { %238 = vperm.xlu0 %432, %v235_v14  }
  0x90   : > { %v208_v6 = vpop.permute.xlu0 %207  ;;  %v199_v7 = vpop.permute.xlu1 %198 }
  0x91   : > { %v210_v8 = vmul.f32 %v208_v6, %v204_v4  ;;  %v201_v9 = vmul.f32 %v199_v7, %v195_v5 }
  0x93   : > { %212 = vrot.lane.b32.xlu1 %v210_v8, %s498_s8  ;;  %203 = vst.msk [vmem:[#allocation2] sm:$0xf] %vm202_vm0, %v201_v9  ;;  %s439_s8 = scalar_lea.vmem %s438_s7, 256 }
  0x94   : > { %p441_p1 = scmp.lt.s32.totalorder %s439_s8, %s433_s19 }
  0x95   : > { %v222_v12 = vpop.permute.xlu0 %221 }
  0x96   : > { %v224_v13 = vmul.f32 %v222_v12, %v218_v10  ;;  %p442_p2 = por %p441_p1, %p440_p0 }
  0x98   : > { %226 = vrot.lane.b32.xlu1 %v224_v13, %s500_s9  ;;  %p443_p3 = pnand %p442_p2, %p436_p13 }
  0x9a   : > { %v205_v15 = vld [vmem:[#allocation2] sm:$0xf]  ;;  %v239_v25 = vpop.permute.xlu0 %238 }
 0x105   : > { %v213_v16 = vpop.permute.xlu1 %212 }
 0x106   : > { %v215_v17 = vadd.f32 %v213_v16, %v205_v15 }
 0x108   : > { %217 = vst.msk [vmem:[#allocation2] sm:$0xf] %vm216_vm2, %v215_v17 }
 0x10a   : > { %v227_v18 = vpop.permute.xlu1 %226 }
 0x10f   : > { %v219_v19 = vld [vmem:[#allocation2] sm:$0xf] }
 0x110   : > { %v229_v20 = vadd.f32 %v227_v18, %v219_v19 }
 0x112   : > { %231 = vst.msk [vmem:[#allocation2] sm:$0xf] %vm230_vm3, %v229_v20 }
 0x119   : > { %v233_v21 = vld [vmem:[#allocation2] sm:$0xf] }
 0x11a   : > { %v234_v22 = vpack.c.bf16 %v233_v21, %v233_v21 }
 0x11c   : > { %v247_v23 = vsel %vm245_vm4, %v234_v22, 0 }
 0x11d   : > { %378 = vmatpush3.bf16.msra.mxu0 %v247_v23 }
 0x120   : > { %380 = vmatmul.mubr.msk.bf16.vlgmr.msra.gmra.mxu0 %vm241_vm5, %v232_v24 }
 0x1e0   : > { %v283_v26 = vpop.f32.mrf.mxu0 }
 0x1e1   : > { %v284_v27 = vadd.f32 %v283_v26, %v239_v25 }
 0x1e2   : > { %v381_v28 = vpop.f32.mrf.mxu0 }
 0x1e3   : > { %290 = vst.msk [vmem:[%s188_s23] sm:$0xff] %vm289_vm6, %v284_v27 }
 0x1e4   : > { %v286_v29 = vpop.f32.mrf.mxu0 }
 0x1e5   : > { %446 = shalt.err (!%p443_p3)
}
 0x1e6   : > { %s447_s9 = scalar_lea.hbm %s595_s30, 128  ;;  %s451_s12 = scalar_lea.hbm %s640_s4, 256 }
 0x1e7   : > { %p448_p4 = scmp.ne.s32.totalorder %s595_s30, %s447_s9  ;;  %p452_p9 = scmp.lt.s32.totalorder %s595_s30, %s640_s4 }
 0x1e8   : > { %p453_p10 = scmp.lt.s32.totalorder %s451_s12, %s447_s9 }
 0x1e9   : > { %p449_p7 = pnand %p448_p4, %p566_p5 }
 0x1ea   : > { %p454_p11 = por %p453_p10, %p452_p9 }
 0x1eb   : > { %p450_p8 = pneg %p449_p7 }
 0x1ed   : > { %p455_p12 = pnand %p454_p11, %p450_p8 }
 0x1ef   : > { %458 = shalt.err (!%p455_p12)
}
 0x1f0   : > { %383 = dma.vmem_to_hbm [thread:$0]  (%p566_p5), %s597_s27, 128, %s595_s30, %s292_s5   ;;  %v382_v30 = vpop.f32.mrf.mxu0 }
 0x1f1 PF: > { %p389_p13 = scmp.ge.s32.totalorder %s493_s18, 2  ;;  %s317_s20 = sand.u32 1, %s481_s15  }
 0x1f2   : > { %s318_s22 = scalar_lea.sflag [#allocation4], %s317_s20 }
 0x1f3   : > { %p386_p0 = pnand %p389_p13, %p570_p6 }
 0x1f5   : > { %p387_p1 = pneg %p386_p0 }
 0x1f7   : > { %476 = dma.done.wait (%p387_p1), %s318_s22, 128  }
 0x1f8   : > { %478 = vsyncadd (%p387_p1), %s318_s22, 4294967168  ;;  %p14_p2 = scmp.ge.s32.totalorder %s553_s21, 4   ;;  %s643_s15 = smov %s485_s16 }
 0x1f9   : > { %s644_s16 = smov %s489_s17  ;;  %s645_s17 = smov %s564_s24 }
 0x1fa   : > { %s646_s18 = smov %s553_s21  ;;  %16 = sbr.rel (!%p14_p2) target bundleno = 3 (0x3), region = 71 }
 0x1ff   :  { %323 = vsyncpa [#allocation4], 1 }
 0x200   :  { %325 = vsyncpa [#allocation4 + $0x1], 1 }

</bundles_post_ra>
